<compile_context>
chip_gen: v5e
topology: v5e:2x2
jax: 0.10.0
libtpu: 0.0.40
codegen_flags: <defaults>
</compile_context>

<pallas_src>
import math
from functools import partial

import jax
import jax.numpy as jnp
from jax.experimental import pallas as pl
from jax.experimental.pallas import tpu as pltpu

LN_EPS = 1e-5


# --------------------------------------------------------------------------
# small shared math helpers (usable both inside kernels and in the reference)
# --------------------------------------------------------------------------
def _layer_norm(x, w, b):
    # x: (..., D); w, b broadcastable to x
    mean = jnp.mean(x, axis=-1, keepdims=True)
    var = jnp.mean((x - mean) ** 2, axis=-1, keepdims=True)
    return (x - mean) * jax.lax.rsqrt(var + LN_EPS) * w + b


def _gelu_exact(x):
    # PyTorch nn.GELU default (erf-based)
    return 0.5 * x * (1.0 + jax.lax.erf(x * (1.0 / math.sqrt(2.0))))


# --------------------------------------------------------------------------
# Encoder block kernel
# --------------------------------------------------------------------------
def encoder_kernel(x_ref, ln_w_ref, ln_b_ref,
                   wqkv_ref, bqkv_ref, wo_ref, bo_ref,
                   w1_ref, b1_ref, w2_ref, b2_ref,
                   out_ref, *, num_heads):
    # TODO(synk): dropout (attention / MLP) is identity -- eval-mode semantics.
    x = x_ref[...]                      # (L, D) f32   (L = torch "seq" axis)
    L, D = x.shape
    hd = D // num_heads

    ln_w = ln_w_ref[...]                # (1, D) f32 (shared LN, applied twice)
    ln_b = ln_b_ref[...]

    # ---- LayerNorm #1 (f32) ----
    nx = _layer_norm(x, ln_w, ln_b)

    # ---- fused QKV projection; 1/sqrt(hd) pre-folded into q weights/bias ----
    qkv = jnp.dot(nx.astype(jnp.bfloat16), wqkv_ref[...],
                  preferred_element_type=jnp.float32) + bqkv_ref[...]   # (L, 3D) f32
    q = qkv[:, 0 * D:1 * D]
    k = qkv[:, 1 * D:2 * D]
    v = qkv[:, 2 * D:3 * D]

    # ---- head-batched attention ----
    # (H, L, hd) operands are assembled with static lane slices + a
    # leading-axis stack (reliably lowerable in Mosaic, unlike a minor-dim
    # reshape); the score / context contractions are single batched MXU
    # einsums instead of a per-head loop of small dots and K transposes.
    def split_heads(t):                 # (L, D) -> (H, L, hd)
        return jnp.stack([t[:, h * hd:(h + 1) * hd] for h in range(num_heads)],
                         axis=0)

    qh = split_heads(q).astype(jnp.bfloat16)
    kh = split_heads(k).astype(jnp.bfloat16)
    vh = split_heads(v).astype(jnp.bfloat16)

    s = jnp.einsum("hqd,hkd->hqk", qh, kh,
                   preferred_element_type=jnp.float32)          # (H, L, L) f32
    s = s - jnp.max(s, axis=-1, keepdims=True)
    p = jnp.exp(s)
    inv_denom = pl.reciprocal(jnp.sum(p, axis=-1, keepdims=True), approx=True)
    ctx = jnp.einsum("hqk,hkd->hqd", p.astype(jnp.bfloat16), vh,
                     preferred_element_type=jnp.float32)        # (H, L, hd) f32
    ctx = ctx * inv_denom               # defer softmax normalization past p@v
    ctx = jnp.concatenate([ctx[h] for h in range(num_heads)], axis=-1)  # (L, D)

    attn_out = jnp.dot(ctx.astype(jnp.bfloat16), wo_ref[...],
                       preferred_element_type=jnp.float32) + bo_ref[...]

    # ---- residual #1 (f32) ----
    first_add = attn_out + x

    # ---- LayerNorm #2 (same shared weights) ----
    na = _layer_norm(first_add, ln_w, ln_b)

    # ---- MLP: Linear(D, 4D) -> GELU -> Linear(4D, D) ----
    h1 = jnp.dot(na.astype(jnp.bfloat16), w1_ref[...],
                 preferred_element_type=jnp.float32) + b1_ref[...]
    h1 = _gelu_exact(h1)
    mlp_out = jnp.dot(h1.astype(jnp.bfloat16), w2_ref[...],
                      preferred_element_type=jnp.float32) + b2_ref[...]

    # ---- residual #2 ----
    out_ref[...] = (mlp_out + first_add).astype(out_ref.dtype)


def _prep_encoder(lp, num_heads):
    """Transpose / cast per-layer weights for the kernel; fold the attention
    scale into the q part of the fused in_proj (free, done once on host)."""
    D = lp["ln_w"].shape[0]
    hd = D // num_heads
    scale = 1.0 / math.sqrt(hd)
    qkv_scale = jnp.concatenate([jnp.full((D,), scale, jnp.float32),
                                 jnp.ones((2 * D,), jnp.float32)])
    return dict(
        ln_w=lp["ln_w"].reshape(1, D),
        ln_b=lp["ln_b"].reshape(1, D),
        wqkv_t=(lp["in_proj_w"].T * qkv_scale[None, :]).astype(jnp.bfloat16),
        bqkv=(lp["in_proj_b"] * qkv_scale).reshape(1, 3 * D),
        wo_t=lp["out_proj_w"].T.astype(jnp.bfloat16),
        bo=lp["out_proj_b"].reshape(1, D),
        w1_t=lp["mlp_w1"].T.astype(jnp.bfloat16),
        b1=lp["mlp_b1"].reshape(1, 4 * D),
        w2_t=lp["mlp_w2"].T.astype(jnp.bfloat16),
        b2=lp["mlp_b2"].reshape(1, D),
    )


def encoder_layer(x_sbd, kp, num_heads):
    """x_sbd: (S, B, D) = (tokens, image-batch, latent) float32."""
    S, B, D = x_sbd.shape
    args = (x_sbd,
            kp["ln_w"], kp["ln_b"],
            kp["wqkv_t"], kp["bqkv"],
            kp["wo_t"], kp["bo"],
            kp["w1_t"], kp["b1"],
            kp["w2_t"], kp["b2"])

    # Activation: one (B, D) slab per grid step (token).  Weights: full blocks
    # with a constant index_map so they stay resident across the whole grid.
    x_spec = pl.BlockSpec((None, B, D), lambda s: (s, 0, 0))
    w_specs = [pl.BlockSpec(a.shape, lambda s: (0, 0)) for a in args[1:]]
    out_spec = pl.BlockSpec((None, B, D), lambda s: (s, 0, 0))

    # Explicit VMEM budget: 2x (double buffering) of every resident block plus
    # a rough allowance for in-kernel intermediates, clamped to a range that is
    # valid on v5e/v6e (128 MiB) and v7x (64 MiB per TensorCore).
    weight_bytes = sum(int(a.size) * a.dtype.itemsize for a in args[1:])
    act_block_bytes = 2 * B * D * 4
    scratch_bytes = 4 * (3 * num_heads * B * B + 2 * B * 4 * D + 8 * B * D)
    vmem_limit = int(min(max(2 * (weight_bytes + act_block_bytes)
                             + scratch_bytes + (4 << 20),
                             32 << 20),
                         64 << 20))

    return pl.pallas_call(
        partial(encoder_kernel, num_heads=num_heads),
        out_shape=jax.ShapeDtypeStruct((S, B, D), jnp.float32),
        grid=(S,),
        in_specs=[x_spec] + w_specs,
        out_specs=out_spec,
        compiler_params=pltpu.CompilerParams(
            dimension_semantics=("parallel",),
            vmem_limit_bytes=vmem_limit,
        ),
    )(*args)


# --------------------------------------------------------------------------
# small single-shot Pallas kernels: patch-embedding projection and mlp_head
# --------------------------------------------------------------------------
def linear_kernel(x_ref, w_ref, b_ref, o_ref):
    o_ref[...] = (jnp.dot(x_ref[...], w_ref[...],
                          preferred_element_type=jnp.float32)
                  + b_ref[...]).astype(o_ref.dtype)


def pallas_linear(x2d, w_t, b_row):
    M = x2d.shape[0]
    N = w_t.shape[1]
    return pl.pallas_call(
        linear_kernel,
        out_shape=jax.ShapeDtypeStruct((M, N), jnp.float32),
    )(x2d, w_t, b_row)


def mlp_head_kernel(x_ref, ln_w_ref, ln_b_ref, w1_ref, b1_ref, w2_ref, b2_ref,
                    o_ref):
    z = _layer_norm(x_ref[...], ln_w_ref[...], ln_b_ref[...])
    z = jnp.dot(z, w1_ref[...], preferred_element_type=jnp.float32) + b1_ref[...]
    o_ref[...] = (jnp.dot(z, w2_ref[...], preferred_element_type=jnp.float32)
                  + b2_ref[...]).astype(o_ref.dtype)


def pallas_mlp_head(cls_tokens, hp):
    B, D = cls_tokens.shape
    nc = hp["w2"].shape[0]
    return pl.pallas_call(
        mlp_head_kernel,
        out_shape=jax.ShapeDtypeStruct((B, nc), jnp.float32),
    )(cls_tokens,
      hp["ln_w"].reshape(1, D), hp["ln_b"].reshape(1, D),
      hp["w1"].T, hp["b1"].reshape(1, D),
      hp["w2"].T, hp["b2"].reshape(1, nc))


# --------------------------------------------------------------------------
# host-side glue: patch extraction, positional encoding (pure layout / tables)
# --------------------------------------------------------------------------
# TODO(synk): patch extraction, class-token concat and the positional-encoding
# table are pure layout / table-generation ops with no compute -- kept as thin
# host-side JAX ops rather than Pallas kernels.
def extract_patches(x, patch_size):
    """PyTorch PatchExtractor: (B, C, H, W) -> (B, n_patches, C*p*p)."""
    B, C, H, W = x.shape
    p = patch_size
    assert H % p == 0 and W % p == 0
    xp = x.reshape(B, C, H // p, p, W // p, p)
    xp = jnp.transpose(xp, (0, 2, 4, 1, 3, 5))          # (B, Hp, Wp, C, p, p)
    return xp.reshape(B, (H // p) * (W // p), C * p * p)


def positional_encoding(seq_len, d, n=10000.0):
    k = jnp.arange(seq_len, dtype=jnp.float32)[:, None]
    i = jnp.arange(d // 2, dtype=jnp.float32)[None, :]
    angles = k / (n ** (2.0 * i / d))
    pe = jnp.zeros((seq_len, d), jnp.float32)
    pe = pe.at[:, 0::2].set(jnp.sin(angles))
    pe = pe.at[:, 1::2].set(jnp.cos(angles))
    return pe


# --------------------------------------------------------------------------
# full ViT forward (Pallas path)
# --------------------------------------------------------------------------
def vit_forward(x, params, cfg):
    ps = cfg["patch_size"]
    D = cfg["latent_dim"]
    num_heads = cfg["num_heads"]
    B = x.shape[0]

    patches = extract_patches(x, ps)                    # (B, P, 3*p*p)
    P, in_dim = patches.shape[1], patches.shape[2]

    emb = pallas_linear(patches.reshape(B * P, in_dim),
                        params["proj_w"].T,
                        params["proj_b"].reshape(1, D)).reshape(B, P, D)

    # class token appended LAST along the token axis -- exactly as the
    # PyTorch module does (and ViT.forward later selects token index 0).
    tokens = jnp.concatenate([emb, params["class_tokens"]], axis=1)   # (B, S, D)
    S = P + 1
    tokens = tokens + positional_encoding(S, D)[None, :, :]

    # One small layout transpose into (tokens, batch, D); the whole encoder
    # stack then runs transpose-free (grid over the token axis).
    h = jnp.transpose(tokens, (1, 0, 2))                # (S, B, D)
    for lp in params["encoders"]:
        h = encoder_layer(h, _prep_encoder(lp, num_heads), num_heads)

    cls = h[0]                                          # == encoded[:, 0, :]  (B, D)
    return pallas_mlp_head(cls, params["head"])         # (B, num_classes)


# --------------------------------------------------------------------------
# pure-JAX f32 reference (mirrors the PyTorch module exactly)
# --------------------------------------------------------------------------
def _ref_encoder(x, lp, num_heads):
    # x: (L, N, D) in nn.MultiheadAttention's seq-first view (L = image batch).
    L, N, D = x.shape
    hd = D // num_heads

    def ln(t):
        return _layer_norm(t, lp["ln_w"], lp["ln_b"])

    nx = ln(x)
    qkv = nx @ lp["in_proj_w"].T + lp["in_proj_b"]
    q, k, v = jnp.split(qkv, 3, axis=-1)

    def heads(t):  # (L, N, D) -> (N, H, L, hd)
        return jnp.transpose(t.reshape(L, N, num_heads, hd), (1, 2, 0, 3))

    qh, kh, vh = heads(q), heads(k), heads(v)
    s = jnp.einsum("nhld,nhmd->nhlm", qh, kh) / math.sqrt(hd)
    p = jax.nn.softmax(s, axis=-1)
    ctx = jnp.einsum("nhlm,nhmd->nhld", p, vh)
    ctx = jnp.transpose(ctx, (2, 0, 1, 3)).reshape(L, N, D)
    attn_out = ctx @ lp["out_proj_w"].T + lp["out_proj_b"]

    first_add = attn_out + x
    na = ln(first_add)
    h1 = _gelu_exact(na @ lp["mlp_w1"].T + lp["mlp_b1"])
    mlp_out = h1 @ lp["mlp_w2"].T + lp["mlp_b2"]
    return mlp_out + first_add


def vit_reference(x, params, cfg):
    ps = cfg["patch_size"]
    D = cfg["latent_dim"]
    patches = extract_patches(x, ps)
    emb = patches @ params["proj_w"].T + params["proj_b"]
    tokens = jnp.concatenate([emb, params["class_tokens"]], axis=1)
    S = tokens.shape[1]
    tokens = tokens + positional_encoding(S, D)[None, :, :]

    h = tokens                                      # (B, S, D) fed seq-first, as in torch
    for lp in params["encoders"]:
        h = _ref_encoder(h, lp, cfg["num_heads"])

    cls = h[:, 0, :]
    hp = params["head"]
    z = _layer_norm(cls, hp["ln_w"], hp["ln_b"])
    z = z @ hp["w1"].T + hp["b1"]
    return z @ hp["w2"].T + hp["b2"]


# --------------------------------------------------------------------------
# deterministic parameter init (PyTorch-layout weights, f32)
# --------------------------------------------------------------------------
def _init_encoder(k, D):
    ks = jax.random.split(k, 10)
    s = 0.02
    return {
        "ln_w": 1.0 + 0.1 * jax.random.normal(ks[0], (D,), jnp.float32),
        "ln_b": 0.1 * jax.random.normal(ks[1], (D,), jnp.float32),
        "in_proj_w": s * jax.random.normal(ks[2], (3 * D, D), jnp.float32),
        "in_proj_b": s * jax.random.normal(ks[3], (3 * D,), jnp.float32),
        "out_proj_w": s * jax.random.normal(ks[4], (D, D), jnp.float32),
        "out_proj_b": s * jax.random.normal(ks[5], (D,), jnp.float32),
        "mlp_w1": s * jax.random.normal(ks[6], (4 * D, D), jnp.float32),
        "mlp_b1": s * jax.random.normal(ks[7], (4 * D,), jnp.float32),
        "mlp_w2": s * jax.random.normal(ks[8], (D, 4 * D), jnp.float32),
        "mlp_b2": s * jax.random.normal(ks[9], (D,), jnp.float32),
    }


def _init_head(k, D, nc):
    ks = jax.random.split(k, 6)
    s = 0.02
    return {
        "ln_w": 1.0 + 0.1 * jax.random.normal(ks[0], (D,), jnp.float32),
        "ln_b": 0.1 * jax.random.normal(ks[1], (D,), jnp.float32),
        "w1": s * jax.random.normal(ks[2], (D, D), jnp.float32),
        "b1": s * jax.random.normal(ks[3], (D,), jnp.float32),
        "w2": s * jax.random.normal(ks[4], (nc, D), jnp.float32),
        "b2": s * jax.random.normal(ks[5], (nc,), jnp.float32),
    }


def init_params(key, cfg, batch_size):
    D = cfg["latent_dim"]
    in_dim = 3 * cfg["patch_size"] * cfg["patch_size"]
    ks = jax.random.split(key, 4 + cfg["num_encoders"])
    return {
        "proj_w": 0.02 * jax.random.normal(ks[0], (D, in_dim), jnp.float32),
        "proj_b": 0.02 * jax.random.normal(ks[1], (D,), jnp.float32),
        "class_tokens": jax.random.normal(ks[2], (batch_size, 1, D), jnp.float32),
        "head": _init_head(ks[3], D, cfg["num_classes"]),
        "encoders": [_init_encoder(ks[4 + i], D)
                     for i in range(cfg["num_encoders"])],
    }


# --------------------------------------------------------------------------
if __name__ == "__main__":
    cfg = dict(patch_size=8, latent_dim=32, num_heads=4,
               num_encoders=2, num_classes=10)
    B, C, Himg, Wimg = 2, 3, 16, 16

    key = jax.random.PRNGKey(0)
    kx, kp = jax.random.split(key)
    x = jax.random.normal(kx, (B, C, Himg, Wimg), jnp.float32)
    params = init_params(kp, cfg, B)

    fwd = jax.jit(lambda xx, pp: vit_forward(xx, pp, cfg))
    logits = jax.block_until_ready(fwd(x, params))

    ref = vit_reference(x, params, cfg)
    assert logits.shape == (B, cfg["num_classes"])
    max_err = float(jnp.max(jnp.abs(logits - ref)))
    assert jnp.allclose(logits, ref, atol=2e-2, rtol=2e-2), (
        f"mismatch vs reference: max abs err = {max_err}")

    print("KERNEL_OK")
</pallas_src>

<mosaic_0001>
module attributes {stable_mosaic.version = 11 : i64} {
  func.func @linear_kernel(%arg0: memref<8x192xf32, #tpu.memory_space<vmem>>, %arg1: memref<192x32xf32, #tpu.memory_space<vmem>>, %arg2: memref<1x32xf32, #tpu.memory_space<vmem>>, %arg3: memref<8x32xf32, #tpu.memory_space<vmem>>) attributes {dimension_semantics = [], scalar_prefetch = 0 : i64, scratch_operands = 0 : i64, tpu.core_type = #tpu.core_type<tc>} {
    %c0 = arith.constant 0 : index
    %c0_0 = arith.constant 0 : index
    %0 = vector.load %arg0[%c0, %c0_0] : memref<8x192xf32, #tpu.memory_space<vmem>>, vector<8x192xf32>
    %c0_1 = arith.constant 0 : index
    %c0_2 = arith.constant 0 : index
    %1 = vector.load %arg1[%c0_1, %c0_2] : memref<192x32xf32, #tpu.memory_space<vmem>>, vector<192x32xf32>
    %cst = arith.constant dense<0.000000e+00> : vector<8x32xf32>
    %2 = tpu.matmul %0, %1, %cst {dimension_numbers = #tpu.dot_dimension_numbers<[1], [0], [0], [1], [0, 0, 1, 1], [], []>} : vector<8x192xf32>, vector<192x32xf32>, vector<8x32xf32> -> vector<8x32xf32>
    %c0_3 = arith.constant 0 : index
    %c0_4 = arith.constant 0 : index
    %3 = vector.load %arg2[%c0_3, %c0_4] : memref<1x32xf32, #tpu.memory_space<vmem>>, vector<1x32xf32>
    %4 = vector.broadcast %3 : vector<1x32xf32> to vector<8x32xf32>
    %5 = arith.addf %2, %4 : vector<8x32xf32>
    %c0_5 = arith.constant 0 : index
    %c0_6 = arith.constant 0 : index
    %6 = vector.load %arg3[%c0_5, %c0_6] : memref<8x32xf32, #tpu.memory_space<vmem>>, vector<8x32xf32>
    tpu.vector_store %arg3[%c0_5, %c0_6], %5 {strides = array<i32>} : memref<8x32xf32, #tpu.memory_space<vmem>>, vector<8x32xf32>,
    return
  }
}

module attributes {stable_mosaic.version = 11 : i64} {
  func.func @mlp_head_kernel(%arg0: memref<2x32xf32, #tpu.memory_space<vmem>>, %arg1: memref<1x32xf32, #tpu.memory_space<vmem>>, %arg2: memref<1x32xf32, #tpu.memory_space<vmem>>, %arg3: memref<32x32xf32, #tpu.memory_space<vmem>>, %arg4: memref<1x32xf32, #tpu.memory_space<vmem>>, %arg5: memref<32x10xf32, #tpu.memory_space<vmem>>, %arg6: memref<1x10xf32, #tpu.memory_space<vmem>>, %arg7: memref<2x10xf32, #tpu.memory_space<vmem>>) attributes {dimension_semantics = [], scalar_prefetch = 0 : i64, scratch_operands = 0 : i64, tpu.core_type = #tpu.core_type<tc>} {
    %c0 = arith.constant 0 : index
    %c0_0 = arith.constant 0 : index
    %0 = vector.load %arg0[%c0, %c0_0] : memref<2x32xf32, #tpu.memory_space<vmem>>, vector<2x32xf32>
    %c0_1 = arith.constant 0 : index
    %c0_2 = arith.constant 0 : index
    %1 = vector.load %arg1[%c0_1, %c0_2] : memref<1x32xf32, #tpu.memory_space<vmem>>, vector<1x32xf32>
    %c0_3 = arith.constant 0 : index
    %c0_4 = arith.constant 0 : index
    %2 = vector.load %arg2[%c0_3, %c0_4] : memref<1x32xf32, #tpu.memory_space<vmem>>, vector<1x32xf32>
    %cst = arith.constant dense<0.000000e+00> : vector<2xf32>
    %3 = vector.multi_reduction <add>, %0, %cst [1] : vector<2x32xf32> to vector<2xf32>
    %4 = vector.shape_cast %3 : vector<2xf32> to vector<2x1xf32>
    %cst_5 = arith.constant 3.200000e+01 : f32
    %5 = vector.broadcast %cst_5 : f32 to vector<2x1xf32>
    %6 = arith.divf %4, %5 : vector<2x1xf32>
    %7 = vector.broadcast %6 : vector<2x1xf32> to vector<2x32xf32>
    %8 = arith.subf %0, %7 : vector<2x32xf32>
    %9 = arith.mulf %8, %8 : vector<2x32xf32>
    %cst_6 = arith.constant dense<0.000000e+00> : vector<2xf32>
    %10 = vector.multi_reduction <add>, %9, %cst_6 [1] : vector<2x32xf32> to vector<2xf32>
    %11 = vector.shape_cast %10 : vector<2xf32> to vector<2x1xf32>
    %cst_7 = arith.constant 3.200000e+01 : f32
    %12 = vector.broadcast %cst_7 : f32 to vector<2x1xf32>
    %13 = arith.divf %11, %12 : vector<2x1xf32>
    %14 = vector.broadcast %6 : vector<2x1xf32> to vector<2x32xf32>
    %15 = arith.subf %0, %14 : vector<2x32xf32>
    %cst_8 = arith.constant 9.99999974E-6 : f32
    %16 = vector.broadcast %cst_8 : f32 to vector<2x1xf32>
    %17 = arith.addf %13, %16 : vector<2x1xf32>
    %18 = math.rsqrt %17 : vector<2x1xf32>
    %19 = vector.broadcast %18 : vector<2x1xf32> to vector<2x32xf32>
    %20 = arith.mulf %15, %19 : vector<2x32xf32>
    %21 = vector.broadcast %1 : vector<1x32xf32> to vector<2x32xf32>
    %22 = arith.mulf %20, %21 : vector<2x32xf32>
    %23 = vector.broadcast %2 : vector<1x32xf32> to vector<2x32xf32>
    %24 = arith.addf %22, %23 : vector<2x32xf32>
    %c0_9 = arith.constant 0 : index
    %c0_10 = arith.constant 0 : index
    %25 = vector.load %arg3[%c0_9, %c0_10] : memref<32x32xf32, #tpu.memory_space<vmem>>, vector<32x32xf32>
    %cst_11 = arith.constant dense<0.000000e+00> : vector<2x32xf32>
    %26 = tpu.matmul %24, %25, %cst_11 {dimension_numbers = #tpu.dot_dimension_numbers<[1], [0], [0], [1], [0, 0, 1, 1], [], []>} : vector<2x32xf32>, vector<32x32xf32>, vector<2x32xf32> -> vector<2x32xf32>
    %c0_12 = arith.constant 0 : index
    %c0_13 = arith.constant 0 : index
    %27 = vector.load %arg4[%c0_12, %c0_13] : memref<1x32xf32, #tpu.memory_space<vmem>>, vector<1x32xf32>
    %28 = vector.broadcast %27 : vector<1x32xf32> to vector<2x32xf32>
    %29 = arith.addf %26, %28 : vector<2x32xf32>
    %c0_14 = arith.constant 0 : index
    %c0_15 = arith.constant 0 : index
    %30 = vector.load %arg5[%c0_14, %c0_15] : memref<32x10xf32, #tpu.memory_space<vmem>>, vector<32x10xf32>
    %cst_16 = arith.constant dense<0.000000e+00> : vector<2x10xf32>
    %31 = tpu.matmul %29, %30, %cst_16 {dimension_numbers = #tpu.dot_dimension_numbers<[1], [0], [0], [1], [0, 0, 1, 1], [], []>} : vector<2x32xf32>, vector<32x10xf32>, vector<2x10xf32> -> vector<2x10xf32>
    %c0_17 = arith.constant 0 : index
    %c0_18 = arith.constant 0 : index
    %32 = vector.load %arg6[%c0_17, %c0_18] : memref<1x10xf32, #tpu.memory_space<vmem>>, vector<1x10xf32>
    %33 = vector.broadcast %32 : vector<1x10xf32> to vector<2x10xf32>
    %34 = arith.addf %31, %33 : vector<2x10xf32>
    %c0_19 = arith.constant 0 : index
    %c0_20 = arith.constant 0 : index
    %35 = vector.load %arg7[%c0_19, %c0_20] : memref<2x10xf32, #tpu.memory_space<vmem>>, vector<2x10xf32>
    tpu.vector_store %arg7[%c0_19, %c0_20], %34 {strides = array<i32>} : memref<2x10xf32, #tpu.memory_space<vmem>>, vector<2x10xf32>,
    return
  }
}

module attributes {stable_mosaic.version = 11 : i64} {
  func.func @encoder_kernel(%arg0: i32, %arg1: memref<1x2x32xf32, #tpu.memory_space<vmem>>, %arg2: memref<1x32xf32, #tpu.memory_space<vmem>>, %arg3: memref<1x32xf32, #tpu.memory_space<vmem>>, %arg4: memref<32x96xbf16, #tpu.memory_space<vmem>>, %arg5: memref<1x96xf32, #tpu.memory_space<vmem>>, %arg6: memref<32x32xbf16, #tpu.memory_space<vmem>>, %arg7: memref<1x32xf32, #tpu.memory_space<vmem>>, %arg8: memref<32x128xbf16, #tpu.memory_space<vmem>>, %arg9: memref<1x128xf32, #tpu.memory_space<vmem>>, %arg10: memref<128x32xbf16, #tpu.memory_space<vmem>>, %arg11: memref<1x32xf32, #tpu.memory_space<vmem>>, %arg12: memref<1x2x32xf32, #tpu.memory_space<vmem>>) attributes {dimension_semantics = [#tpu.dimension_semantics<parallel>], iteration_bounds = array<i64: 5>, scalar_prefetch = 0 : i64, scratch_operands = 0 : i64, tpu.core_type = #tpu.core_type<tc>, window_params = [{transform_indices = @transform_0, window_bounds = array<i64: 1, 2, 32>}, {pipeline_mode = #tpu.pipeline_mode<synchronous>, transform_indices = @transform_1, window_bounds = array<i64: 1, 32>}, {pipeline_mode = #tpu.pipeline_mode<synchronous>, transform_indices = @transform_2, window_bounds = array<i64: 1, 32>}, {pipeline_mode = #tpu.pipeline_mode<synchronous>, transform_indices = @transform_3, window_bounds = array<i64: 32, 96>}, {pipeline_mode = #tpu.pipeline_mode<synchronous>, transform_indices = @transform_4, window_bounds = array<i64: 1, 96>}, {pipeline_mode = #tpu.pipeline_mode<synchronous>, transform_indices = @transform_5, window_bounds = array<i64: 32, 32>}, {pipeline_mode = #tpu.pipeline_mode<synchronous>, transform_indices = @transform_6, window_bounds = array<i64: 1, 32>}, {pipeline_mode = #tpu.pipeline_mode<synchronous>, transform_indices = @transform_7, window_bounds = array<i64: 32, 128>}, {pipeline_mode = #tpu.pipeline_mode<synchronous>, transform_indices = @transform_8, window_bounds = array<i64: 1, 128>}, {pipeline_mode = #tpu.pipeline_mode<synchronous>, transform_indices = @transform_9, window_bounds = array<i64: 128, 32>}, {pipeline_mode = #tpu.pipeline_mode<synchronous>, transform_indices = @transform_10, window_bounds = array<i64: 1, 32>}, {transform_indices = @transform_11, window_bounds = array<i64: 1, 2, 32>}]} {
    %c0 = arith.constant 0 : index
    %c0_0 = arith.constant 0 : index
    %c0_1 = arith.constant 0 : index
    %0 = vector.load %arg1[%c0, %c0_0, %c0_1] : memref<1x2x32xf32, #tpu.memory_space<vmem>>, vector<1x2x32xf32>
    %1 = vector.shape_cast %0 : vector<1x2x32xf32> to vector<2x32xf32>
    %c0_2 = arith.constant 0 : index
    %c0_3 = arith.constant 0 : index
    %2 = vector.load %arg2[%c0_2, %c0_3] : memref<1x32xf32, #tpu.memory_space<vmem>>, vector<1x32xf32>
    %c0_4 = arith.constant 0 : index
    %c0_5 = arith.constant 0 : index
    %3 = vector.load %arg3[%c0_4, %c0_5] : memref<1x32xf32, #tpu.memory_space<vmem>>, vector<1x32xf32>
    %cst = arith.constant dense<0.000000e+00> : vector<2xf32>
    %4 = vector.multi_reduction <add>, %1, %cst [1] : vector<2x32xf32> to vector<2xf32>
    %5 = vector.shape_cast %4 : vector<2xf32> to vector<2x1xf32>
    %cst_6 = arith.constant 3.200000e+01 : f32
    %6 = vector.broadcast %cst_6 : f32 to vector<2x1xf32>
    %7 = arith.divf %5, %6 : vector<2x1xf32>
    %8 = vector.broadcast %7 : vector<2x1xf32> to vector<2x32xf32>
    %9 = arith.subf %1, %8 : vector<2x32xf32>
    %10 = arith.mulf %9, %9 : vector<2x32xf32>
    %cst_7 = arith.constant dense<0.000000e+00> : vector<2xf32>
    %11 = vector.multi_reduction <add>, %10, %cst_7 [1] : vector<2x32xf32> to vector<2xf32>
    %12 = vector.shape_cast %11 : vector<2xf32> to vector<2x1xf32>
    %cst_8 = arith.constant 3.200000e+01 : f32
    %13 = vector.broadcast %cst_8 : f32 to vector<2x1xf32>
    %14 = arith.divf %12, %13 : vector<2x1xf32>
    %15 = vector.broadcast %7 : vector<2x1xf32> to vector<2x32xf32>
    %16 = arith.subf %1, %15 : vector<2x32xf32>
    %cst_9 = arith.constant 9.99999974E-6 : f32
    %17 = vector.broadcast %cst_9 : f32 to vector<2x1xf32>
    %18 = arith.addf %14, %17 : vector<2x1xf32>
    %19 = math.rsqrt %18 : vector<2x1xf32>
    %20 = vector.broadcast %19 : vector<2x1xf32> to vector<2x32xf32>
    %21 = arith.mulf %16, %20 : vector<2x32xf32>
    %22 = vector.broadcast %2 : vector<1x32xf32> to vector<2x32xf32>
    %23 = arith.mulf %21, %22 : vector<2x32xf32>
    %24 = vector.broadcast %3 : vector<1x32xf32> to vector<2x32xf32>
    %25 = arith.addf %23, %24 : vector<2x32xf32>
    %26 = arith.truncf %25 : vector<2x32xf32> to vector<2x32xbf16>
    %c0_10 = arith.constant 0 : index
    %c0_11 = arith.constant 0 : index
    %27 = vector.load %arg4[%c0_10, %c0_11] : memref<32x96xbf16, #tpu.memory_space<vmem>>, vector<32x96xbf16>
    %cst_12 = arith.constant dense<0.000000e+00> : vector<2x96xf32>
    %28 = tpu.matmul %26, %27, %cst_12 {dimension_numbers = #tpu.dot_dimension_numbers<[1], [0], [0], [1], [0, 0, 1, 1], [], []>} : vector<2x32xbf16>, vector<32x96xbf16>, vector<2x96xf32> -> vector<2x96xf32>
    %c0_13 = arith.constant 0 : index
    %c0_14 = arith.constant 0 : index
    %29 = vector.load %arg5[%c0_13, %c0_14] : memref<1x96xf32, #tpu.memory_space<vmem>>, vector<1x96xf32>
    %30 = vector.broadcast %29 : vector<1x96xf32> to vector<2x96xf32>
    %31 = arith.addf %28, %30 : vector<2x96xf32>
    %32 = vector.extract_strided_slice %31 {offsets = [0, 0], sizes = [2, 32], strides = [1, 1]} : vector<2x96xf32> to vector<2x32xf32>
    %33 = vector.extract_strided_slice %31 {offsets = [0, 32], sizes = [2, 32], strides = [1, 1]} : vector<2x96xf32> to vector<2x32xf32>
    %34 = vector.extract_strided_slice %31 {offsets = [0, 64], sizes = [2, 32], strides = [1, 1]} : vector<2x96xf32> to vector<2x32xf32>
    %35 = vector.extract_strided_slice %32 {offsets = [0, 0], sizes = [2, 8], strides = [1, 1]} : vector<2x32xf32> to vector<2x8xf32>
    %36 = vector.extract_strided_slice %32 {offsets = [0, 8], sizes = [2, 8], strides = [1, 1]} : vector<2x32xf32> to vector<2x8xf32>
    %37 = vector.extract_strided_slice %32 {offsets = [0, 16], sizes = [2, 8], strides = [1, 1]} : vector<2x32xf32> to vector<2x8xf32>
    %38 = vector.extract_strided_slice %32 {offsets = [0, 24], sizes = [2, 8], strides = [1, 1]} : vector<2x32xf32> to vector<2x8xf32>
    %39 = vector.shape_cast %35 : vector<2x8xf32> to vector<1x2x8xf32>
    %40 = vector.shape_cast %36 : vector<2x8xf32> to vector<1x2x8xf32>
    %41 = vector.shape_cast %37 : vector<2x8xf32> to vector<1x2x8xf32>
    %42 = vector.shape_cast %38 : vector<2x8xf32> to vector<1x2x8xf32>
    %43 = tpu.concatenate %39, %40, %41, %42 in 0 : vector<1x2x8xf32>, vector<1x2x8xf32>, vector<1x2x8xf32>, vector<1x2x8xf32> -> vector<4x2x8xf32>
    %44 = arith.truncf %43 : vector<4x2x8xf32> to vector<4x2x8xbf16>
    %45 = vector.extract_strided_slice %33 {offsets = [0, 0], sizes = [2, 8], strides = [1, 1]} : vector<2x32xf32> to vector<2x8xf32>
    %46 = vector.extract_strided_slice %33 {offsets = [0, 8], sizes = [2, 8], strides = [1, 1]} : vector<2x32xf32> to vector<2x8xf32>
    %47 = vector.extract_strided_slice %33 {offsets = [0, 16], sizes = [2, 8], strides = [1, 1]} : vector<2x32xf32> to vector<2x8xf32>
    %48 = vector.extract_strided_slice %33 {offsets = [0, 24], sizes = [2, 8], strides = [1, 1]} : vector<2x32xf32> to vector<2x8xf32>
    %49 = vector.shape_cast %45 : vector<2x8xf32> to vector<1x2x8xf32>
    %50 = vector.shape_cast %46 : vector<2x8xf32> to vector<1x2x8xf32>
    %51 = vector.shape_cast %47 : vector<2x8xf32> to vector<1x2x8xf32>
    %52 = vector.shape_cast %48 : vector<2x8xf32> to vector<1x2x8xf32>
    %53 = tpu.concatenate %49, %50, %51, %52 in 0 : vector<1x2x8xf32>, vector<1x2x8xf32>, vector<1x2x8xf32>, vector<1x2x8xf32> -> vector<4x2x8xf32>
    %54 = arith.truncf %53 : vector<4x2x8xf32> to vector<4x2x8xbf16>
    %55 = vector.extract_strided_slice %34 {offsets = [0, 0], sizes = [2, 8], strides = [1, 1]} : vector<2x32xf32> to vector<2x8xf32>
    %56 = vector.extract_strided_slice %34 {offsets = [0, 8], sizes = [2, 8], strides = [1, 1]} : vector<2x32xf32> to vector<2x8xf32>
    %57 = vector.extract_strided_slice %34 {offsets = [0, 16], sizes = [2, 8], strides = [1, 1]} : vector<2x32xf32> to vector<2x8xf32>
    %58 = vector.extract_strided_slice %34 {offsets = [0, 24], sizes = [2, 8], strides = [1, 1]} : vector<2x32xf32> to vector<2x8xf32>
    %59 = vector.shape_cast %55 : vector<2x8xf32> to vector<1x2x8xf32>
    %60 = vector.shape_cast %56 : vector<2x8xf32> to vector<1x2x8xf32>
    %61 = vector.shape_cast %57 : vector<2x8xf32> to vector<1x2x8xf32>
    %62 = vector.shape_cast %58 : vector<2x8xf32> to vector<1x2x8xf32>
    %63 = tpu.concatenate %59, %60, %61, %62 in 0 : vector<1x2x8xf32>, vector<1x2x8xf32>, vector<1x2x8xf32>, vector<1x2x8xf32> -> vector<4x2x8xf32>
    %64 = arith.truncf %63 : vector<4x2x8xf32> to vector<4x2x8xbf16>
    "tpu.trace_start"() <{level = 10 : i32, message = "hqd,hkd->hqk"}> : () -> ()
    %cst_15 = arith.constant dense<0.000000e+00> : vector<4x2x2xf32>
    %65 = tpu.matmul %44, %54, %cst_15 {dimension_numbers = #tpu.dot_dimension_numbers<[2], [2], [1], [1], [0, 0, 0, 1, 1, 1], [0], [0]>} : vector<4x2x8xbf16>, vector<4x2x8xbf16>, vector<4x2x2xf32> -> vector<4x2x2xf32>
    "tpu.trace_stop"() : () -> ()
    %cst_16 = arith.constant dense<0xFF800000> : vector<4x2xf32>
    %66 = vector.multi_reduction <maximumf>, %65, %cst_16 [2] : vector<4x2x2xf32> to vector<4x2xf32>
    %67 = vector.shape_cast %66 : vector<4x2xf32> to vector<4x2x1xf32>
    %68 = vector.broadcast %67 : vector<4x2x1xf32> to vector<4x2x2xf32>
    %69 = arith.subf %65, %68 : vector<4x2x2xf32>
    %70 = math.exp %69 : vector<4x2x2xf32>
    %cst_17 = arith.constant dense<0.000000e+00> : vector<4x2xf32>
    %71 = vector.multi_reduction <add>, %70, %cst_17 [2] : vector<4x2x2xf32> to vector<4x2xf32>
    %72 = vector.shape_cast %71 : vector<4x2xf32> to vector<4x2x1xf32>
    %73 = tpu.reciprocal %72 {approx = true} : vector<4x2x1xf32> -> vector<4x2x1xf32>
    %74 = arith.truncf %70 : vector<4x2x2xf32> to vector<4x2x2xbf16>
    "tpu.trace_start"() <{level = 10 : i32, message = "hqk,hkd->hqd"}> : () -> ()
    %cst_18 = arith.constant dense<0.000000e+00> : vector<4x2x8xf32>
    %75 = tpu.matmul %74, %64, %cst_18 {dimension_numbers = #tpu.dot_dimension_numbers<[2], [1], [1], [2], [0, 0, 0, 1, 1, 2], [0], [0]>} : vector<4x2x2xbf16>, vector<4x2x8xbf16>, vector<4x2x8xf32> -> vector<4x2x8xf32>
    "tpu.trace_stop"() : () -> ()
    %76 = vector.broadcast %73 : vector<4x2x1xf32> to vector<4x2x8xf32>
    %77 = arith.mulf %75, %76 : vector<4x2x8xf32>
    %78 = vector.extract_strided_slice %77 {offsets = [0, 0, 0], sizes = [1, 2, 8], strides = [1, 1, 1]} : vector<4x2x8xf32> to vector<1x2x8xf32>
    %79 = vector.shape_cast %78 : vector<1x2x8xf32> to vector<2x8xf32>
    %80 = vector.extract_strided_slice %77 {offsets = [1, 0, 0], sizes = [1, 2, 8], strides = [1, 1, 1]} : vector<4x2x8xf32> to vector<1x2x8xf32>
    %81 = vector.shape_cast %80 : vector<1x2x8xf32> to vector<2x8xf32>
    %82 = vector.extract_strided_slice %77 {offsets = [2, 0, 0], sizes = [1, 2, 8], strides = [1, 1, 1]} : vector<4x2x8xf32> to vector<1x2x8xf32>
    %83 = vector.shape_cast %82 : vector<1x2x8xf32> to vector<2x8xf32>
    %84 = vector.extract_strided_slice %77 {offsets = [3, 0, 0], sizes = [1, 2, 8], strides = [1, 1, 1]} : vector<4x2x8xf32> to vector<1x2x8xf32>
    %85 = vector.shape_cast %84 : vector<1x2x8xf32> to vector<2x8xf32>
    %86 = tpu.concatenate %79, %81, %83, %85 in 1 : vector<2x8xf32>, vector<2x8xf32>, vector<2x8xf32>, vector<2x8xf32> -> vector<2x32xf32>
    %87 = arith.truncf %86 : vector<2x32xf32> to vector<2x32xbf16>
    %c0_19 = arith.constant 0 : index
    %c0_20 = arith.constant 0 : index
    %88 = vector.load %arg6[%c0_19, %c0_20] : memref<32x32xbf16, #tpu.memory_space<vmem>>, vector<32x32xbf16>
    %cst_21 = arith.constant dense<0.000000e+00> : vector<2x32xf32>
    %89 = tpu.matmul %87, %88, %cst_21 {dimension_numbers = #tpu.dot_dimension_numbers<[1], [0], [0], [1], [0, 0, 1, 1], [], []>} : vector<2x32xbf16>, vector<32x32xbf16>, vector<2x32xf32> -> vector<2x32xf32>
    %c0_22 = arith.constant 0 : index
    %c0_23 = arith.constant 0 : index
    %90 = vector.load %arg7[%c0_22, %c0_23] : memref<1x32xf32, #tpu.memory_space<vmem>>, vector<1x32xf32>
    %91 = vector.broadcast %90 : vector<1x32xf32> to vector<2x32xf32>
    %92 = arith.addf %89, %91 : vector<2x32xf32>
    %93 = arith.addf %92, %1 : vector<2x32xf32>
    %cst_24 = arith.constant dense<0.000000e+00> : vector<2xf32>
    %94 = vector.multi_reduction <add>, %93, %cst_24 [1] : vector<2x32xf32> to vector<2xf32>
    %95 = vector.shape_cast %94 : vector<2xf32> to vector<2x1xf32>
    %cst_25 = arith.constant 3.200000e+01 : f32
    %96 = vector.broadcast %cst_25 : f32 to vector<2x1xf32>
    %97 = arith.divf %95, %96 : vector<2x1xf32>
    %98 = vector.broadcast %97 : vector<2x1xf32> to vector<2x32xf32>
    %99 = arith.subf %93, %98 : vector<2x32xf32>
    %100 = arith.mulf %99, %99 : vector<2x32xf32>
    %cst_26 = arith.constant dense<0.000000e+00> : vector<2xf32>
    %101 = vector.multi_reduction <add>, %100, %cst_26 [1] : vector<2x32xf32> to vector<2xf32>
    %102 = vector.shape_cast %101 : vector<2xf32> to vector<2x1xf32>
    %cst_27 = arith.constant 3.200000e+01 : f32
    %103 = vector.broadcast %cst_27 : f32 to vector<2x1xf32>
    %104 = arith.divf %102, %103 : vector<2x1xf32>
    %105 = vector.broadcast %97 : vector<2x1xf32> to vector<2x32xf32>
    %106 = arith.subf %93, %105 : vector<2x32xf32>
    %cst_28 = arith.constant 9.99999974E-6 : f32
    %107 = vector.broadcast %cst_28 : f32 to vector<2x1xf32>
    %108 = arith.addf %104, %107 : vector<2x1xf32>
    %109 = math.rsqrt %108 : vector<2x1xf32>
    %110 = vector.broadcast %109 : vector<2x1xf32> to vector<2x32xf32>
    %111 = arith.mulf %106, %110 : vector<2x32xf32>
    %112 = vector.broadcast %2 : vector<1x32xf32> to vector<2x32xf32>
    %113 = arith.mulf %111, %112 : vector<2x32xf32>
    %114 = vector.broadcast %3 : vector<1x32xf32> to vector<2x32xf32>
    %115 = arith.addf %113, %114 : vector<2x32xf32>
    %116 = arith.truncf %115 : vector<2x32xf32> to vector<2x32xbf16>
    %c0_29 = arith.constant 0 : index
    %c0_30 = arith.constant 0 : index
    %117 = vector.load %arg8[%c0_29, %c0_30] : memref<32x128xbf16, #tpu.memory_space<vmem>>, vector<32x128xbf16>
    %cst_31 = arith.constant dense<0.000000e+00> : vector<2x128xf32>
    %118 = tpu.matmul %116, %117, %cst_31 {dimension_numbers = #tpu.dot_dimension_numbers<[1], [0], [0], [1], [0, 0, 1, 1], [], []>} : vector<2x32xbf16>, vector<32x128xbf16>, vector<2x128xf32> -> vector<2x128xf32>
    %c0_32 = arith.constant 0 : index
    %c0_33 = arith.constant 0 : index
    %119 = vector.load %arg9[%c0_32, %c0_33] : memref<1x128xf32, #tpu.memory_space<vmem>>, vector<1x128xf32>
    %120 = vector.broadcast %119 : vector<1x128xf32> to vector<2x128xf32>
    %121 = arith.addf %118, %120 : vector<2x128xf32>
    %cst_34 = arith.constant 5.000000e-01 : f32
    %122 = vector.broadcast %cst_34 : f32 to vector<2x128xf32>
    %123 = arith.mulf %122, %121 : vector<2x128xf32>
    %cst_35 = arith.constant 0.707106769 : f32
    %124 = vector.broadcast %cst_35 : f32 to vector<2x128xf32>
    %125 = arith.mulf %121, %124 : vector<2x128xf32>
    %126 = math.erf %125 : vector<2x128xf32>
    %cst_36 = arith.constant 1.000000e+00 : f32
    %127 = vector.broadcast %cst_36 : f32 to vector<2x128xf32>
    %128 = arith.addf %127, %126 : vector<2x128xf32>
    %129 = arith.mulf %123, %128 : vector<2x128xf32>
    %130 = arith.truncf %129 : vector<2x128xf32> to vector<2x128xbf16>
    %c0_37 = arith.constant 0 : index
    %c0_38 = arith.constant 0 : index
    %131 = vector.load %arg10[%c0_37, %c0_38] : memref<128x32xbf16, #tpu.memory_space<vmem>>, vector<128x32xbf16>
    %cst_39 = arith.constant dense<0.000000e+00> : vector<2x32xf32>
    %132 = tpu.matmul %130, %131, %cst_39 {dimension_numbers = #tpu.dot_dimension_numbers<[1], [0], [0], [1], [0, 0, 1, 1], [], []>} : vector<2x128xbf16>, vector<128x32xbf16>, vector<2x32xf32> -> vector<2x32xf32>
    %c0_40 = arith.constant 0 : index
    %c0_41 = arith.constant 0 : index
    %133 = vector.load %arg11[%c0_40, %c0_41] : memref<1x32xf32, #tpu.memory_space<vmem>>, vector<1x32xf32>
    %134 = vector.broadcast %133 : vector<1x32xf32> to vector<2x32xf32>
    %135 = arith.addf %132, %134 : vector<2x32xf32>
    %136 = arith.addf %135, %93 : vector<2x32xf32>
    %c0_42 = arith.constant 0 : index
    %c0_43 = arith.constant 0 : index
    %c0_44 = arith.constant 0 : index
    %137 = vector.load %arg12[%c0_42, %c0_43, %c0_44] : memref<1x2x32xf32, #tpu.memory_space<vmem>>, vector<1x2x32xf32>
    %138 = vector.shape_cast %137 : vector<1x2x32xf32> to vector<2x32xf32>
    %139 = vector.shape_cast %136 : vector<2x32xf32> to vector<1x2x32xf32>
    tpu.vector_store %arg12[%c0_42, %c0_43, %c0_44], %139 {strides = array<i32>} : memref<1x2x32xf32, #tpu.memory_space<vmem>>, vector<1x2x32xf32>,
    return
  }
  func.func @transform_0(%arg0: i32) -> (i32, i32, i32) {
    %c0_i32 = arith.constant 0 : i32
    %c0_i32_0 = arith.constant 0 : i32
    %c0_i32_1 = arith.constant 0 : i32
    return %arg0, %c0_i32, %c0_i32_0 : i32, i32, i32
  }
  func.func @transform_1(%arg0: i32) -> (i32, i32) {
    %c0_i32 = arith.constant 0 : i32
    %c0_i32_0 = arith.constant 0 : i32
    %c0_i32_1 = arith.constant 0 : i32
    return %c0_i32, %c0_i32_0 : i32, i32
  }
  func.func @transform_2(%arg0: i32) -> (i32, i32) {
    %c0_i32 = arith.constant 0 : i32
    %c0_i32_0 = arith.constant 0 : i32
    %c0_i32_1 = arith.constant 0 : i32
    return %c0_i32, %c0_i32_0 : i32, i32
  }
  func.func @transform_3(%arg0: i32) -> (i32, i32) {
    %c0_i32 = arith.constant 0 : i32
    %c0_i32_0 = arith.constant 0 : i32
    %c0_i32_1 = arith.constant 0 : i32
    return %c0_i32, %c0_i32_0 : i32, i32
  }
  func.func @transform_4(%arg0: i32) -> (i32, i32) {
    %c0_i32 = arith.constant 0 : i32
    %c0_i32_0 = arith.constant 0 : i32
    %c0_i32_1 = arith.constant 0 : i32
    return %c0_i32, %c0_i32_0 : i32, i32
  }
  func.func @transform_5(%arg0: i32) -> (i32, i32) {
    %c0_i32 = arith.constant 0 : i32
    %c0_i32_0 = arith.constant 0 : i32
    %c0_i32_1 = arith.constant 0 : i32
    return %c0_i32, %c0_i32_0 : i32, i32
  }
  func.func @transform_6(%arg0: i32) -> (i32, i32) {
    %c0_i32 = arith.constant 0 : i32
    %c0_i32_0 = arith.constant 0 : i32
    %c0_i32_1 = arith.constant 0 : i32
    return %c0_i32, %c0_i32_0 : i32, i32
  }
  func.func @transform_7(%arg0: i32) -> (i32, i32) {
    %c0_i32 = arith.constant 0 : i32
    %c0_i32_0 = arith.constant 0 : i32
    %c0_i32_1 = arith.constant 0 : i32
    return %c0_i32, %c0_i32_0 : i32, i32
  }
  func.func @transform_8(%arg0: i32) -> (i32, i32) {
    %c0_i32 = arith.constant 0 : i32
    %c0_i32_0 = arith.constant 0 : i32
    %c0_i32_1 = arith.constant 0 : i32
    return %c0_i32, %c0_i32_0 : i32, i32
  }
  func.func @transform_9(%arg0: i32) -> (i32, i32) {
    %c0_i32 = arith.constant 0 : i32
    %c0_i32_0 = arith.constant 0 : i32
    %c0_i32_1 = arith.constant 0 : i32
    return %c0_i32, %c0_i32_0 : i32, i32
  }
  func.func @transform_10(%arg0: i32) -> (i32, i32) {
    %c0_i32 = arith.constant 0 : i32
    %c0_i32_0 = arith.constant 0 : i32
    %c0_i32_1 = arith.constant 0 : i32
    return %c0_i32, %c0_i32_0 : i32, i32
  }
  func.func @transform_11(%arg0: i32) -> (i32, i32, i32) {
    %c0_i32 = arith.constant 0 : i32
    %c0_i32_0 = arith.constant 0 : i32
    %c0_i32_1 = arith.constant 0 : i32
    return %arg0, %c0_i32, %c0_i32_0 : i32, i32, i32
  }
}

</mosaic_0001>

<bundles_post_ra>
// kernel: _lambda_.4
= control target key start
LH: loop header
LB: loop body
LE: loop exit
PB: predicated region body
PF: predicated region fallthrough
CT: control target
= control target key end

     0   :  { %vm44_vm0 = vcmask 523264   ;;  %vm88_vm1 = vcmask 261120   ;;  %s200_s1 = inlined_call_operand.vmem [shape: f32[192,32], index: 1, kind: input, shape index: {}]   ;;  %s201_s2 = inlined_call_operand.vmem [shape: f32[1,32], index: 2, kind: input, shape index: {}]   ;;  %s202_s0 = inlined_call_operand.vmem [shape: f32[8,192], index: 0, kind: input, shape index: {}]   ;;  %s203_s3 = inlined_call_operand.vmem [shape: f32[8,32], index: 3, kind: output, shape index: {}]  }
   0x1   :  { %v31_v0 = vld [vmem:[%s200_s1 + $0x78] sm:$0xff]  ;;  %v30_v1 = vld [vmem:[%s200_s1 + $0x70] sm:$0xff]  ;;  %v29_v2 = vld [vmem:[%s200_s1 + $0x68] sm:$0xff] }
   0x2   :  { %48 = vmatpush.msra.mxu0 %v31_v0  ;;  %v39_v3 = vld [vmem:[%s200_s1 + $0xb8] sm:$0xff]  ;;  %v28_v4 = vld [vmem:[%s200_s1 + $0x60] sm:$0xff]  ;;  %v38_v5 = vld [vmem:[%s200_s1 + $0xb0] sm:$0xff] }
   0x3   :  { %76 = vmatpush.msra.mxu1 %v39_v3  ;;  %v37_v6 = vld [vmem:[%s200_s1 + $0xa8] sm:$0xff]  ;;  %v27_v7 = vld [vmem:[%s200_s1 + $0x58] sm:$0xff]  ;;  %v36_v8 = vld [vmem:[%s200_s1 + $0xa0] sm:$0xff] }
   0x4   :  { %49 = vmatpush.msra.mxu0 %v30_v1  ;;  %v26_v9 = vld [vmem:[%s200_s1 + $0x50] sm:$0xff]  ;;  %v35_v10 = vld [vmem:[%s200_s1 + $0x98] sm:$0xff]  ;;  %v25_v11 = vld [vmem:[%s200_s1 + $0x48] sm:$0xff] }
   0x5   :  { %77 = vmatpush.msra.mxu1 %v38_v5  ;;  %v34_v12 = vld [vmem:[%s200_s1 + $0x90] sm:$0xff]  ;;  %v24_v13 = vld [vmem:[%s200_s1 + $0x40] sm:$0xff]  ;;  %v33_v14 = vld [vmem:[%s200_s1 + $0x88] sm:$0xff] }
   0x6   :  { %50 = vmatpush.msra.mxu0 %v29_v2  ;;  %v23_v15 = vld [vmem:[%s200_s1 + $0x38] sm:$0xff]  ;;  %v32_v16 = vld [vmem:[%s200_s1 + $0x80] sm:$0xff]  ;;  %v22_v17 = vld [vmem:[%s200_s1 + $0x30] sm:$0xff] }
   0x7   :  { %78 = vmatpush.msra.mxu1 %v37_v6  ;;  %v15_v18 = vld [vmem:[%s202_s0 + $0x8] sm:$0xff]  ;;  %v20_v20 = vld [vmem:[%s200_s1 + $0x20] sm:$0xff]  ;;  %v19_v21 = vld [vmem:[%s200_s1 + $0x18] sm:$0xff] }
   0x8   :  { %51 = vmatpush.msra.mxu0 %v28_v4  ;;  %v21_v19 = vld [vmem:[%s200_s1 + $0x28] sm:$0xff]  ;;  %v18_v22 = vld [vmem:[%s200_s1 + $0x10] sm:$0xff]  ;;  %v16_v24 = vld [vmem:[%s200_s1] sm:$0xff] }
   0x9   :  { %79 = vmatpush.msra.mxu1 %v36_v8  ;;  %v17_v23 = vld [vmem:[%s200_s1 + $0x8] sm:$0xff]  ;;  %v14_v25 = vld [vmem:[%s202_s0] sm:$0xff] }
   0xa   :  { %52 = vmatpush.msra.mxu0 %v27_v7  ;;  %v95_v26 = vld [vmem:[%s201_s2] ss:$0 sm:$0xff] }
   0xb   :  { %80 = vmatpush.msra.mxu1 %v35_v10 }
   0xc   :  { %53 = vmatpush.msra.mxu0 %v26_v9 }
   0xd   :  { %81 = vmatpush.msra.mxu1 %v34_v12 }
   0xe   :  { %54 = vmatpush.msra.mxu0 %v25_v11 }
   0xf   :  { %82 = vmatpush.msra.mxu1 %v33_v14 }
  0x10   :  { %55 = vmatpush.msra.mxu0 %v24_v13 }
  0x11   :  { %83 = vmatpush.msra.mxu1 %v32_v16 }
  0x12   :  { %56 = vmatpush.msra.mxu0 %v23_v15  ;;  %94 = vmatmul.msk.f32.vlgmr.msra.gmra.mxu1 %vm44_vm0, %v15_v18 }
  0x14   :  { %57 = vmatpush.msra.mxu0 %v22_v17 }
  0x16   :  { %58 = vmatpush.msra.mxu0 %v21_v19 }
  0x18   :  { %59 = vmatpush.msra.mxu0 %v20_v20 }
  0x1a   :  { %60 = vmatpush.msra.mxu0 %v19_v21 }
  0x1c   :  { %61 = vmatpush.msra.mxu0 %v18_v22 }
  0x1e   :  { %62 = vmatpush.msra.mxu0 %v17_v23 }
  0x20   :  { %63 = vmatpush.msra.mxu0 %v16_v24 }
  0x21   :  { %64 = vmatmul.f32.vlgmr.msra.gmra.mxu0 %v14_v25 }
  0x8f   :  { %v85_v28 = vpop.f32.mrf.mxu1 }
  0x9e   :  { %v65_v27 = vpop.f32.mrf.mxu0 }
  0x9f   :  { %v66_v29 = vadd.f32 %v95_v26, %v65_v27 }
  0xa1   :  { %v86_v30 = vadd.f32 %v85_v28, %v66_v29 }
  0xa3   :  { %89 = vst.msk [vmem:[%s203_s3] sm:$0xff] %vm88_vm1, %v86_v30 }

// kernel: _lambda_.7
= control target key start
LH: loop header
LB: loop body
LE: loop exit
PB: predicated region body
PF: predicated region fallthrough
CT: control target
= control target key end

     0   :  { %vm30_vm0 = vcmask 254976   ;;  %s273_s0 = inlined_call_operand.vmem [shape: f32[2,32], index: 0, kind: input, shape index: {}]   ;;  %s274_s1 = inlined_call_operand.vmem [shape: f32[1,32], index: 1, kind: input, shape index: {}]   ;;  %s275_s2 = inlined_call_operand.vmem [shape: f32[1,32], index: 2, kind: input, shape index: {}]   ;;  %s276_s3 = inlined_call_operand.vmem [shape: f32[32,32], index: 3, kind: input, shape index: {}]   ;;  %s277_s4 = inlined_call_operand.vmem [shape: f32[1,32], index: 4, kind: input, shape index: {}]   ;;  %s278_s5 = inlined_call_operand.vmem [shape: f32[32,10], index: 5, kind: input, shape index: {}]   ;;  %s279_s6 = inlined_call_operand.vmem [shape: f32[1,10], index: 6, kind: input, shape index: {}]   ;;  %s280_s7 = inlined_call_operand.hbm [shape: f32[2,10], index: 7, kind: output, shape index: {}]  }
   0x1   :  { %v27_v0 = vld [vmem:[%s273_s0] sm:$0x3] }
   0x2   :  { %v31_v1 = vsel %vm30_vm0, %v27_v0, 0.0 }
   0x3   :  { %32 = vadd.xlane.f32.xlu0 %v31_v1 }
   0x4   :  { %12 = vsyncpa [#allocation3], 0  ;;  %v187_v2 = vmov 32.0   ;;  %v71_v14 = vld [vmem:[%s276_s3 + $0x18] sm:$0xff]  ;;  %v70_v15 = vld [vmem:[%s276_s3 + $0x10] sm:$0xff]  ;;  %vm76_vm5 = vcmask 261120  }
   0x5   :  { %157 = vrcp.f32 %v187_v2  ;;  %92 = vmatpush.msra.mxu0 %v71_v14  ;;  %v69_v16 = vld [vmem:[%s276_s3 + $0x8] sm:$0xff]  ;;  %v68_v17 = vld [vmem:[%s276_s3] sm:$0xff]  ;;  %v103_v18 = vld [vmem:[%s278_s5 + $0x18] sm:$0xff]  ;;  %s188_s23 = smov [#allocation2]   ;;  %s140_s26 = sshll.u32 %s280_s7, 4  ;;  %vm131_vm6 = vcmask 74752   ;;  %s141_s26 = int_to_ptr.hbm [resolvable:$true] %s140_s26 }
   0x6   :  { %v102_v19 = vld [vmem:[%s278_s5 + $0x10] sm:$0xff]  ;;  %123 = vmatpush.msra.mxu1 %v103_v18  ;;  %v153_v29 = vld [vmem:[%s274_s1] ss:$0 sm:$0xff]  ;;  %v101_v35 = vld [vmem:[%s278_s5 + $0x8] sm:$0xff]  ;;  %s138_s24 = sshll.u32 %s188_s23, 4  ;;  %s139_s24 = int_to_ptr.vmem [resolvable:$true] %s138_s24 }
   0x7   :  { %93 = vmatpush.msra.mxu0 %v70_v15  ;;  %v154_v32 = vld [vmem:[%s275_s2] ss:$0 sm:$0xff] }
   0x8   :  { %124 = vmatpush.msra.mxu1 %v102_v19  ;;  %v100_v36 = vld [vmem:[%s278_s5] sm:$0xff] }
   0x9   :  { %94 = vmatpush.msra.mxu0 %v69_v16  ;;  %v155_v37 = vld [vmem:[%s277_s4] ss:$0 sm:$0xff] }
   0xa   :  { %125 = vmatpush.msra.mxu1 %v101_v35  ;;  %v156_v40 = vld [vmem:[%s279_s6] ss:$0 sm:$0xff] }
   0xb   :  { %v158_v3 = vpop.eup %157  ;;  %95 = vmatpush.msra.mxu0 %v68_v17 }
   0xc   :  { %v35_v4 = vmul.f32 32.0, %v158_v3  ;;  %vm39_vm1 = vweird.f32 %v158_v3  ;;  %126 = vmatpush.msra.mxu1 %v100_v36 }
   0xe   :  { %v36_v5 = vsub.f32 1.0, %v35_v4 }
  0x10   :  { %v37_v6 = vmul.f32 %v158_v3, %v36_v5 }
  0x12   :  { %v38_v7 = vadd.f32 %v158_v3, %v37_v6 }
  0x14   :  { %v40_v8 = vsel %vm39_vm1, %v158_v3, %v38_v7 }
  0x76   :  { %v33_v9 = vpop.xlane.xlu0 %32 }
  0x77   :  { %v41_v10 = vmul.f32 %v40_v8, %v33_v9 }
  0x79   :  { %v42_v11 = vsub.f32 %v27_v0, %v41_v10 }
  0x7b   :  { %v43_v12 = vmul.f32 %v42_v11, %v42_v11 }
  0x7d   :  { %v44_v13 = vsel %vm30_vm0, %v43_v12, 0.0 }
  0x7e   :  { %45 = vadd.xlane.f32.xlu0 %v44_v13 }
  0xf1   :  { %v46_v20 = vpop.xlane.xlu0 %45 }
  0xf2   :  { %v47_v21 = vmul.f32 %v46_v20, %v40_v8 }
  0xf4   :  { %v48_v22 = vadd.f32 1e-05, %v47_v21 }
  0xf6   :  { %159 = vrsqrt.f32 %v48_v22  ;;  %vm55_vm3 = vweird.f32 %v48_v22 }
  0xfc   :  { %v160_v23 = vpop.eup %159 }
  0xfd   :  { %v50_v24 = vmul.f32 %v160_v23, %v48_v22  ;;  %vm56_vm2 = vweird.f32 %v160_v23 }
  0xfe   :  { %vm57_vm4 = vmor %vm55_vm3, %vm56_vm2 }
  0xff   :  { %v51_v25 = vmul.f32 %v160_v23, %v50_v24 }
 0x101   :  { %v52_v26 = vmul.f32 0.5, %v51_v25 }
 0x103   :  { %v53_v27 = vsub.f32 1.5, %v52_v26 }
 0x105   :  { %v54_v28 = vmul.f32 %v160_v23, %v53_v27 }
 0x107   :  { %v58_v30 = vsel %vm57_vm4, %v160_v23, %v54_v28 }
 0x108   :  { %v59_v31 = vmul.f32 %v58_v30, %v42_v11 }
 0x10a   :  { %v63_v33 = vmul.f32 %v153_v29, %v59_v31 }
 0x10c   :  { %v67_v34 = vadd.f32 %v154_v32, %v63_v33 }
 0x10e   :  { %149 = vmatmul.msk.f32.vlgmr.msra.gmra.mxu0 %vm76_vm5, %v67_v34 }
 0x18b   :  { %v97_v38 = vpop.f32.mrf.mxu0 }
 0x18c   :  { %v98_v39 = vadd.f32 %v155_v37, %v97_v38 }
 0x18e   :  { %150 = vmatmul.msk.f32.vlgmr.msra.gmra.mxu1 %vm76_vm5, %v98_v39 }
 0x20b   :  { %v128_v41 = vpop.f32.mrf.mxu1 }
 0x20c   :  { %v129_v42 = vadd.f32 %v156_v40, %v128_v41 }
 0x20e   :  { %132 = vst.msk [vmem:[#allocation2] sm:$0x3] %vm131_vm6, %v129_v42 }
 0x20f   :  { %143 = dma.vmem_to_hbm [thread:$0]  %s139_s24, 32, %s141_s26, [#allocation3]  }
 0x210   :  { %185 = dma.done.wait [#allocation3], 32  }
 0x211   :  { %186 = vsyncadd [#allocation3], 4294967264 }
 0x212   :  { %148 = vsyncpa [#allocation3], 1 }

// kernel: _lambda_.5
= control target key start
LH: loop header
LB: loop body
LE: loop exit
PB: predicated region body
PF: predicated region fallthrough
CT: control target
= control target key end

     0   :  { %s1220_s17 = smov 0   ;;  %s1361_s0 = inlined_call_operand.vmem [shape: f32[5,2,32], index: 0, kind: input, shape index: {}]   ;;  %s1362_s1 = inlined_call_operand.vmem [shape: f32[1,32], index: 1, kind: input, shape index: {}]   ;;  %s1363_s2 = inlined_call_operand.vmem [shape: f32[1,32], index: 2, kind: input, shape index: {}]   ;;  %s1364_s3 = inlined_call_operand.vmem [shape: bf16[32,96], index: 3, kind: input, shape index: {}]   ;;  %s1365_s4 = inlined_call_operand.vmem [shape: f32[1,96], index: 4, kind: input, shape index: {}]   ;;  %s1366_s5 = inlined_call_operand.vmem [shape: bf16[32,32], index: 5, kind: input, shape index: {}]   ;;  %s1367_s6 = inlined_call_operand.vmem [shape: f32[1,32], index: 6, kind: input, shape index: {}]   ;;  %s1368_s7 = inlined_call_operand.vmem [shape: bf16[32,128], index: 7, kind: input, shape index: {}]   ;;  %s1369_s8 = inlined_call_operand.vmem [shape: f32[1,128], index: 8, kind: input, shape index: {}]   ;;  %s1370_s9 = inlined_call_operand.vmem [shape: bf16[128,32], index: 9, kind: input, shape index: {}]   ;;  %s1371_s10 = inlined_call_operand.vmem [shape: f32[1,32], index: 10, kind: input, shape index: {}]   ;;  %s1372_s11 = inlined_call_operand.vmem [shape: f32[5,2,32], index: 11, kind: output, shape index: {}]  }
   0x1 LB: > { %s1005_s18 = sadd.s32 4294967295, %s1149_s17   ;;  %p1009_p0 = scmp.ge.s32.totalorder %s1149_s17, 1  ;;  %s1149_s17 = sphi %s1220_s17, %s21_s17  }
   0x2   : > { %p336_p1 = scmp.lt.s32.totalorder %s1149_s17, 6 }
   0x4   : > { %p337_p2 = pnand %p1009_p0, %p336_p1 }
   0x5   : > { %p374_p3 = scmp.lt.s32.totalorder (!%p337_p2), %s1005_s18, 4  ;;  %s1152_s14 = smov (!%p337_p2), 104  }
   0x6   : > { %340 = sbr.rel (%p337_p2) target bundleno = 1907 (0x773), region = 64  ;;  %s1153_s15 = smov (!%p337_p2), 120  }
   0x7   : > { %s1154_s16 = smov (!%p337_p2), 112   ;;  %s1155_s20 = smov (!%p337_p2), 96  }
   0x8   : > { %s1156_s21 = smov (!%p337_p2), 64   ;;  %s1158_s23 = smov (!%p337_p2), 8  }
   0x9   : > { %s1159_s24 = smov (!%p337_p2), 16  }
   0xb   : > { %s1374_s18 = smov (!%p374_p3, %s1005_s18), 4  ;;  %vm386_vm0 = vcmask 254976   ;;  %v1151_v2 = vmov 32.0   ;;  %v1083_v14 = vld [vmem:[%s1364_s3 + $0x8] sm:$0xff]  ;;  %v1082_v15 = vld [vmem:[%s1364_s3] sm:$0xff]  ;;  %vm445_vm5 = vcmask 261120  }
   0xc   : > { %s1010_s19 = sshll.u32 %s1374_s18, 1  ;;  %1119 = vrcp.f32 %v1151_v2  ;;  %455 = vmatpush.bf16.msra.mxu0 %v1083_v14  ;;  %v1255_v25 = vld [vmem:[%s1362_s1] ss:$0 sm:$0xff]  ;;  %vm481_vm6 = vcmask 64512   ;;  %vm573_vm7 = vcmask 9216   ;;  %vm624_vm8 = vcmask 1040384  }
   0xd   : > { %s377_s22 = scalar_lea.vmem %s1361_s0, %s1010_s19  ;;  %v1260_v28 = vld [vmem:[%s1363_s2] ss:$0 sm:$0xff]  ;;  %vm620_vm9 = vcmask 15360   ;;  %vm721_vm10 = vcmask 130048   ;;  %vm723_vm11 = vcmask 195584   ;;  %s381_s25 = scalar_lea.vmem %s1372_s11, %s1010_s19 }
   0xe   : > { %v1236_v0 = vld [vmem:[%s377_s22] sm:$0x3]  ;;  %s1157_s22 = smov 24  }
   0xf   : > { %v387_v1 = vsel %vm386_vm0, %v1236_v0, 0.0  ;;  %v1115_v32 = vld [vmem:[%s1365_s4] ss:$0 sm:$0xff] }
  0x10   : > { %388 = vadd.xlane.f32.xlu0 %v387_v1  ;;  %456 = vmatpush.bf16.msra.mxu0 %v1082_v15 }
  0x12   : > { %v1120_v3 = vpop.eup %1119 }
  0x13   : > { %v391_v4 = vmul.f32 32.0, %v1120_v3  ;;  %vm395_vm1 = vweird.f32 %v1120_v3 }
  0x15   : > { %v392_v5 = vsub.f32 1.0, %v391_v4 }
  0x17   : > { %v393_v6 = vmul.f32 %v1120_v3, %v392_v5 }
  0x19   : > { %v394_v7 = vadd.f32 %v1120_v3, %v393_v6 }
  0x1b   : > { %v1240_v8 = vsel %vm395_vm1, %v1120_v3, %v394_v7 }
  0x83   : > { %v389_v9 = vpop.xlane.xlu0 %388 }
  0x84   : > { %v397_v10 = vmul.f32 %v1240_v8, %v389_v9 }
  0x86   : > { %v398_v11 = vsub.f32 %v1236_v0, %v397_v10 }
  0x88   : > { %v399_v12 = vmul.f32 %v398_v11, %v398_v11 }
  0x8a   : > { %v400_v13 = vsel %vm386_vm0, %v399_v12, 0.0 }
  0x8b   : > { %401 = vadd.xlane.f32.xlu0 %v400_v13 }
  0xfe   : > { %v402_v16 = vpop.xlane.xlu0 %401 }
  0xff   : > { %v403_v17 = vmul.f32 %v402_v16, %v1240_v8 }
 0x101   : > { %v404_v18 = vadd.f32 1e-05, %v403_v17 }
 0x103   : > { %1121 = vrsqrt.f32 %v404_v18  ;;  %vm411_vm3 = vweird.f32 %v404_v18 }
 0x109   : > { %v1122_v19 = vpop.eup %1121 }
 0x10a   : > { %v406_v20 = vmul.f32 %v1122_v19, %v404_v18  ;;  %vm412_vm2 = vweird.f32 %v1122_v19 }
 0x10b   : > { %vm413_vm4 = vmor %vm411_vm3, %vm412_vm2 }
 0x10c   : > { %v407_v21 = vmul.f32 %v1122_v19, %v406_v20 }
 0x10e   : > { %v408_v22 = vmul.f32 0.5, %v407_v21 }
 0x110   : > { %v409_v23 = vsub.f32 1.5, %v408_v22 }
 0x112   : > { %v410_v24 = vmul.f32 %v1122_v19, %v409_v23 }
 0x114   : > { %v414_v26 = vsel %vm413_vm4, %v1122_v19, %v410_v24 }
 0x115   : > { %v415_v27 = vmul.f32 %v414_v26, %v398_v11 }
 0x117   : > { %v419_v29 = vmul.f32 %v1255_v25, %v415_v27 }
 0x119   : > { %v423_v30 = vadd.f32 %v1260_v28, %v419_v29 }
 0x11b   : > { %v424_v31 = vpack.c.bf16 %v423_v30, %v423_v30 }
 0x11d   : > { %1020 = vmatmul.msk.bf16.vlgmr.msra.gmra.mxu0 %vm445_vm5, %v424_v31 }
 0x19a   : > { %v458_v33 = vpop.f32.mrf.mxu0 }
 0x19b   : > { %v459_v34 = vadd.f32 %v1115_v32, %v458_v33 }
 0x19d   : > { %469 = vrot.lane.b32.xlu2 %v459_v34, %s1152_s14  ;;  %463 = vrot.lane.b32.xlu1 %v459_v34, %s1153_s15  ;;  %v472_v44 = vpack.c.bf16 %v459_v34, %v459_v34 }
 0x19f   : > { %v477_v47 = vunpack.c.l.b16 %v472_v44 }
 0x1a1   : > { %v478_v50 = vpack.c.b16 %v477_v47, %v477_v47 }
 0x1a2   : > { %v460_v35 = vpop.f32.mrf.mxu0 }
 0x1a5   : > { %466 = vrot.lane.b32.xlu1 %v459_v34, %s1154_s16 }
 0x1f7   : > { %v470_v36 = vpop.permute.xlu2 %469 }
 0x1f8   : > { %v475_v37 = vpack.c.bf16 %v470_v36, %v470_v36 }
 0x1fa   : > { %v550_v38 = vunpack.c.l.b16 %v475_v37 }
 0x1fc   : > { %v551_v39 = vpack.c.b16 %v550_v38, %v550_v38 }
 0x1fe   : > { %552 = vrot.lane.b32.xlu1 %v551_v39, %s1155_s20 }
 0x20f   : > { %v464_v40 = vpop.permute.xlu1 %463 }
 0x210   : > { %v473_v41 = vpack.c.bf16 %v464_v40, %v464_v40 }
 0x212   : > { %v502_v42 = vunpack.c.l.b16 %v473_v41 }
 0x214   : > { %v503_v43 = vpack.c.b16 %v502_v42, %v502_v42 }
 0x216   : > { %504 = vrot.lane.b32.xlu2 %v503_v43, %s1155_s20 }
 0x217   : > { %v467_v45 = vpop.permute.xlu1 %466 }
 0x218   : > { %v474_v46 = vpack.c.bf16 %v467_v45, %v467_v45 }
 0x21a   : > { %v526_v48 = vunpack.c.l.b16 %v474_v46 }
 0x21c   : > { %v527_v49 = vpack.c.b16 %v526_v48, %v526_v48 }
 0x21e   : > { %528 = vrot.lane.b32.xlu0 %v527_v49, %s1155_s20  ;;  %479 = vrot.lane.b32.xlu2 %v478_v50, %s1155_s20 }
 0x270   : > { %v505_v51 = vpop.permute.xlu2 %504  ;;  %v553_v52 = vpop.permute.xlu1 %552 }
 0x271   : > { %v510_v53 = vsel %vm481_vm6, %v505_v51, 0  ;;  %v558_v54 = vsel %vm481_vm6, %v553_v52, 0 }
 0x272   : > { %519 = vmatpush.bf16.xpose.msra.mxu2 %v510_v53  ;;  %567 = vmatpush.bf16.xpose.msrb.mxu0 %v558_v54 }
 0x278   : > { %v480_v55 = vpop.permute.xlu2 %479 }
 0x279   : > { %1022 = vmatmul.msk.bf16.vlgmr.msra.gmra.mxu2 %vm481_vm6, %v473_v41  ;;  %1024 = vmatmul.msk.bf16.vlgmr.msrb.gmra.mxu0 %vm481_vm6, %v475_v37  ;;  %v486_v56 = vsel %vm481_vm6, %v480_v55, 0 }
 0x27a   : > { %495 = vmatpush.bf16.xpose.msra.mxu1 %v486_v56 }
 0x281   : > { %1021 = vmatmul.msk.bf16.vlgmr.msra.gmra.mxu1 %vm481_vm6, %v472_v44 }
 0x290   : > { %v529_v57 = vpop.permute.xlu0 %528 }
 0x291   : > { %v534_v58 = vsel %vm481_vm6, %v529_v57, 0 }
 0x292   : > { %543 = vmatpush.bf16.xpose.msra.mxu3 %v534_v58  ;;  %v1085_v58 = vld [vmem:[%s1366_s5 + $0x8] sm:$0xff] }
 0x299   : > { %1023 = vmatmul.msk.bf16.vlgmr.msra.gmra.mxu3 %vm481_vm6, %v474_v46 }
 0x2f6   : > { %v569_v59 = vpop.f32.mrf.mxu0 }
 0x2f7   : > { %v583_v60 = vsel %vm573_vm7, %v569_v59, -inf }
 0x2f8   : > { %584 = vmax.xlane.f32.xlu0 %v583_v60 }
 0x2fc   : > { %v521_v61 = vpop.f32.mrf.mxu2 }
 0x2fd   : > { %v577_v62 = vsel %vm573_vm7, %v521_v61, -inf }
 0x2fe   : > { %578 = vmax.xlane.f32.xlu1 %v577_v62  ;;  %v497_v63 = vpop.f32.mrf.mxu1  ;;  %v571_v1 = vpop.f32.mrf.mxu0 }
 0x2ff   : > { %v574_v7 = vsel %vm573_vm7, %v497_v63, -inf }
 0x304   : > { %v523_v2 = vpop.f32.mrf.mxu2 }
 0x306   : > { %v499_v3 = vpop.f32.mrf.mxu1 }
 0x30c   : > { %683 = vrot.lane.b32.xlu0 %v551_v39, %s1156_s21 }
 0x317   : > { %662 = vrot.lane.b32.xlu1 %v527_v49, %s1156_s21 }
 0x31c   : > { %v545_v4 = vpop.f32.mrf.mxu3 }
 0x31d   : > { %v580_v5 = vsel %vm573_vm7, %v545_v4, -inf }
 0x31e   : > { %581 = vmax.xlane.f32.xlu2 %v580_v5 }
 0x31f   : > { %618 = vrot.lane.b32.xlu1 %v478_v50, %s1156_s21 }
 0x324   : > { %v547_v6 = vpop.f32.mrf.mxu3 }
 0x336   : > { %641 = vrot.lane.b32.xlu2 %v503_v43, %s1156_s21 }
 0x35f   : > { %575 = vmax.xlane.f32.xlu2 %v574_v7 }
 0x36b   : > { %v585_v9 = vpop.xlane.xlu0 %584 }
 0x36c   : > { %v589_v10 = vsub.f32 %v569_v59, %v585_v9 }
 0x36e   : > { %v596_v11 = vmul.f32 1.442695, %v589_v10  ;;  %v1116_v10 = vld [vmem:[%s1367_s6] ss:$0 sm:$0xff] }
 0x370   : > { %1123 = vpow2.f32 %v596_v11 }
 0x371   : > { %v579_v12 = vpop.xlane.xlu1 %578 }
 0x372   : > { %v587_v13 = vsub.f32 %v521_v61, %v579_v12  ;;  %v1084_v61 = vld [vmem:[%s1366_s5] sm:$0xff] }
 0x374   : > { %v592_v14 = vmul.f32 1.442695, %v587_v13 }
 0x376   : > { %v1124_v15 = vpop.eup %1123  ;;  %1125 = vpow2.f32 %v592_v14 }
 0x377   : > { %v607_v16 = vsel %vm573_vm7, %v1124_v15, 0.0  ;;  %v617_v21 = vpack.c.bf16 %v1124_v15, %v1124_v15 }
 0x378   : > { %608 = vadd.xlane.f32.xlu2 %v607_v16 }
 0x37c   : > { %v1126_v17 = vpop.eup %1125 }
 0x37d   : > { %v601_v18 = vsel %vm573_vm7, %v1126_v17, 0.0  ;;  %v615_v34 = vpack.c.bf16 %v1126_v17, %v1126_v17 }
 0x37e   : > { %v684_v19 = vpop.permute.xlu0 %683  ;;  %602 = vadd.xlane.f32.xlu0 %v601_v18 }
 0x37f   : > { %v689_v20 = vsel %vm624_vm8, %v684_v19, 0 }
 0x380   : > { %698 = vmatpush.bf16.msra.mxu0 %v689_v20 }
 0x383   : > { %1028 = vmatmul.msk.bf16.vlgmr.msra.gmra.mxu0 %vm620_vm9, %v617_v21  ;;  %v1087_v21 = vld [vmem:[%s1368_s7 + $0x8] sm:$0xff] }
 0x389   : > { %v663_v22 = vpop.permute.xlu1 %662 }
 0x38a   : > { %v668_v23 = vsel %vm624_vm8, %v663_v22, 0 }
 0x38b   : > { %677 = vmatpush.bf16.msrb.mxu3 %v668_v23 }
 0x391   : > { %v619_v24 = vpop.permute.xlu1 %618  ;;  %v582_v26 = vpop.xlane.xlu2 %581 }
 0x392   : > { %v588_v27 = vsub.f32 %v545_v4, %v582_v26  ;;  %v626_v29 = vsel %vm624_vm8, %v619_v24, 0 }
 0x393   : > { %635 = vmatpush.bf16.msrb.mxu1 %v626_v29 }
 0x394   : > { %v594_v30 = vmul.f32 1.442695, %v588_v27 }
 0x396   : > { %1127 = vpow2.f32 %v594_v30 }
 0x397   : > { %755 = vmatpush.bf16.msra.mxu1 %v1085_v58 }
 0x399   : > { %v642_v31 = vpop.permute.xlu2 %641 }
 0x39a   : > { %v647_v32 = vsel %vm624_vm8, %v642_v31, 0 }
 0x39b   : > { %656 = vmatpush.bf16.msrb.mxu2 %v647_v32  ;;  %756 = vmatpush.bf16.msra.mxu1 %v1084_v61 }
 0x39c   : > { %v1128_v33 = vpop.eup %1127 }
 0x39d   : > { %v604_v35 = vsel %vm573_vm7, %v1128_v33, 0.0  ;;  %v616_v36 = vpack.c.bf16 %v1128_v33, %v1128_v33 }
 0x39e   : > { %605 = vadd.xlane.f32.xlu1 %v604_v35  ;;  %1026 = vmatmul.msk.bf16.vlgmr.msrb.gmra.mxu2 %vm620_vm9, %v615_v34 }
 0x39f   : > { %1027 = vmatmul.msk.bf16.vlgmr.msrb.gmra.mxu3 %vm620_vm9, %v616_v36  ;;  %817 = vmatpush.bf16.msra.mxu2 %v1087_v21 }
 0x3d2   : > { %v576_v37 = vpop.xlane.xlu2 %575 }
 0x3d3   : > { %v586_v38 = vsub.f32 %v497_v63, %v576_v37 }
 0x3d5   : > { %v590_v39 = vmul.f32 1.442695, %v586_v38  ;;  %v1094_v38 = vld [vmem:[%s1370_s9 + $0x30] sm:$0xff] }
 0x3d7   : > { %1129 = vpow2.f32 %v590_v39  ;;  %v1117_v39 = vld [vmem:[%s1369_s8] ss:$0 sm:$0xff] }
 0x3dd   : > { %v1130_v40 = vpop.eup %1129 }
 0x3de   : > { %v598_v41 = vsel %vm573_vm7, %v1130_v40, 0.0  ;;  %v614_v42 = vpack.c.bf16 %v1130_v40, %v1130_v40 }
 0x3df   : > { %599 = vadd.xlane.f32.xlu2 %v598_v41 }
 0x3e0   : > { %1025 = vmatmul.msk.bf16.vlgmr.msrb.gmra.mxu1 %vm620_vm9, %v614_v42  ;;  %v1092_v42 = vld [vmem:[%s1370_s9 + $0x20] sm:$0xff] }
 0x3eb   : > { %v609_v43 = vpop.xlane.xlu2 %608 }
 0x3ec   : > { %1131 = vrcp.f32 %v609_v43 }
 0x3f1   : > { %v603_v48 = vpop.xlane.xlu0 %602 }
 0x3f2   : > { %v1132_v44 = vpop.eup %1131  ;;  %1133 = vrcp.f32 %v603_v48 }
 0x3f8   : > { %v1134_v50 = vpop.eup %1133 }
 0x400   : > { %v700_v45 = vpop.f32.mrf.mxu0 }
 0x401   : > { %v707_v46 = vmul.f32 %v1132_v44, %v700_v45 }
 0x403   : > { %717 = vrot.lane.b32.xlu2 %v707_v46, %s1157_s22  ;;  %v1091_v46 = vld [vmem:[%s1370_s9 + $0x18] sm:$0xff] }
 0x408   : > { %v702_v47 = vpop.f32.mrf.mxu0 }
 0x411   : > { %v606_v49 = vpop.xlane.xlu1 %605 }
 0x412   : > { %1135 = vrcp.f32 %v606_v49 }
 0x418   : > { %v1136_v52 = vpop.eup %1135 }
 0x421   : > { %v658_v51 = vpop.f32.mrf.mxu2 }
 0x422   : > { %v705_v53 = vmul.f32 %v1134_v50, %v658_v51  ;;  %v679_v54 = vpop.f32.mrf.mxu3  ;;  %v1090_v51 = vld [vmem:[%s1370_s9 + $0x10] sm:$0xff] }
 0x423   : > { %v706_v55 = vmul.f32 %v1136_v52, %v679_v54 }
 0x424   : > { %709 = vrot.lane.b32.xlu0 %v705_v53, %s1158_s23 }
 0x425   : > { %713 = vrot.lane.b32.xlu1 %v706_v55, %s1159_s24 }
 0x429   : > { %v660_v56 = vpop.f32.mrf.mxu2 }
 0x42a   : > { %v681_v57 = vpop.f32.mrf.mxu3  ;;  %v1089_v56 = vld [vmem:[%s1370_s9 + $0x8] sm:$0xff] }
 0x452   : > { %v600_v62 = vpop.xlane.xlu2 %599 }
 0x453   : > { %1137 = vrcp.f32 %v600_v62 }
 0x459   : > { %v1138_v63 = vpop.eup %1137 }
 0x45d   : > { %v637_v59 = vpop.f32.mrf.mxu1  ;;  %v718_v5 = vpop.permute.xlu2 %717 }
 0x45e   : > { %v704_v1 = vmul.f32 %v1138_v63, %v637_v59 }
 0x465   : > { %v639_v60 = vpop.f32.mrf.mxu1 }
 0x466   : > { %v1088_v60 = vld [vmem:[%s1370_s9] sm:$0xff] }
 0x496   : > { %v710_v2 = vpop.permute.xlu0 %709 }
 0x497   : > { %v720_v3 = vsel %vm481_vm6, %v704_v1, %v710_v2  ;;  %v714_v4 = vpop.permute.xlu1 %713 }
 0x498   : > { %v722_v6 = vsel %vm721_vm10, %v720_v3, %v714_v4 }
 0x499   : > { %v724_v7 = vsel %vm723_vm11, %v722_v6, %v718_v5 }
 0x49a   : > { %v725_v9 = vpack.c.bf16 %v724_v7, %v724_v7 }
 0x49c   : > { %1037 = vmatmul.msk.bf16.vlgmr.msra.gmra.mxu1 %vm445_vm5, %v725_v9 }
 0x519   : > { %v758_v11 = vpop.f32.mrf.mxu1 }
 0x51a   : > { %v759_v12 = vadd.f32 %v1116_v10, %v758_v11 }
 0x51c   : > { %v1304_v13 = vadd.f32 %v759_v12, %v1236_v0  ;;  %v1086_v0 = vld [vmem:[%s1368_s7] sm:$0xff] }
 0x51d   : > { %818 = vmatpush.bf16.msra.mxu2 %v1086_v0 }
 0x51e   : > { %v763_v14 = vsel %vm386_vm0, %v1304_v13, 0.0 }
 0x51f   : > { %764 = vadd.xlane.f32.xlu0 %v763_v14 }
 0x521   : > { %v760_v15 = vpop.f32.mrf.mxu1 }
 0x592   : > { %v765_v16 = vpop.xlane.xlu0 %764 }
 0x593   : > { %v766_v17 = vmul.f32 %v765_v16, %v1240_v8 }
 0x595   : > { %v767_v18 = vsub.f32 %v1304_v13, %v766_v17 }
 0x597   : > { %v768_v19 = vmul.f32 %v767_v18, %v767_v18 }
 0x599   : > { %v769_v20 = vsel %vm386_vm0, %v768_v19, 0.0 }
 0x59a   : > { %770 = vadd.xlane.f32.xlu1 %v769_v20 }
 0x60d   : > { %v771_v22 = vpop.xlane.xlu1 %770 }
 0x60e   : > { %v772_v23 = vmul.f32 %v771_v22, %v1240_v8  ;;  %v1095_v8 = vld [vmem:[%s1370_s9 + $0x38] sm:$0xff] }
 0x60f   : > { %937 = vmatpush.bf16.msra.mxu3 %v1095_v8 }
 0x610   : > { %v773_v24 = vadd.f32 1e-05, %v772_v23 }
 0x612   : > { %1139 = vrsqrt.f32 %v773_v24  ;;  %vm780_vm13 = vweird.f32 %v773_v24 }
 0x613   : > { %938 = vmatpush.bf16.msra.mxu3 %v1094_v38 }
 0x618   : > { %v1140_v26 = vpop.eup %1139 }
 0x619   : > { %v775_v27 = vmul.f32 %v1140_v26, %v773_v24  ;;  %vm781_vm12 = vweird.f32 %v1140_v26 }
 0x61a   : > { %vm782_vm14 = vmor %vm780_vm13, %vm781_vm12 }
 0x61b   : > { %v776_v29 = vmul.f32 %v1140_v26, %v775_v27 }
 0x61d   : > { %v777_v30 = vmul.f32 0.5, %v776_v29 }
 0x61f   : > { %v778_v31 = vsub.f32 1.5, %v777_v30 }
 0x621   : > { %v779_v32 = vmul.f32 %v1140_v26, %v778_v31 }
 0x623   : > { %v783_v33 = vsel %vm782_vm14, %v1140_v26, %v779_v32  ;;  %v1118_v26 = vld [vmem:[%s1371_s10] ss:$0 sm:$0xff] }
 0x624   : > { %v784_v34 = vmul.f32 %v783_v33, %v767_v18 }
 0x626   : > { %v785_v35 = vmul.f32 %v1255_v25, %v784_v34 }
 0x628   : > { %v786_v36 = vadd.f32 %v1260_v28, %v785_v35  ;;  %v1093_v28 = vld [vmem:[%s1370_s9 + $0x28] sm:$0xff] }
 0x629   : > { %939 = vmatpush.bf16.msra.mxu3 %v1093_v28 }
 0x62a   : > { %v787_v37 = vpack.c.bf16 %v786_v36, %v786_v36 }
 0x62c   : > { %1046 = vmatmul.msk.bf16.vlgmr.msra.gmra.mxu2 %vm445_vm5, %v787_v37 }
 0x62d   : > { %940 = vmatpush.bf16.msra.mxu3 %v1092_v42 }
 0x631   : > { %941 = vmatpush.bf16.msra.mxu3 %v1091_v46 }
 0x635   : > { %942 = vmatpush.bf16.msra.mxu3 %v1090_v51 }
 0x639   : > { %943 = vmatpush.bf16.msra.mxu3 %v1089_v56 }
 0x63d   : > { %944 = vmatpush.bf16.msra.mxu3 %v1088_v60 }
 0x6af   : > { %v820_v25 = vpop.f32.mrf.mxu2 }
 0x6b0   : > { %v821_v40 = vadd.f32 %v1117_v39, %v820_v25 }
 0x6b2   : > { %v825_v41 = vmul.f32 0.70710677, %v821_v40  ;;  %v824_v0 = vmul.f32 0.5, %v821_v40 }
 0x6b4   : > { %v826_v43 = vmul.f32 %v825_v41, %v825_v41 }
 0x6b6   : > { %v827_v44 = vmin.f32 %v826_v43, 16.0 }
 0x6b7   : > { %v822_v45 = vpop.f32.mrf.mxu2 }
 0x6b8   : > { %v828_v47 = vmul.f32 2.1237322e-06, %v827_v44  ;;  %v839_v48 = vmul.f32 3.8918573e-05, %v827_v44 }
 0x6ba   : > { %v829_v49 = vadd.f32 0.00028619796, %v828_v47  ;;  %v840_v50 = vadd.f32 0.001143296, %v839_v48 }
 0x6bc   : > { %v830_v52 = vmul.f32 %v829_v49, %v827_v44  ;;  %v841_v53 = vmul.f32 %v840_v50, %v827_v44 }
 0x6be   : > { %v842_v54 = vadd.f32 0.014752088, %v841_v53  ;;  %v831_v55 = vadd.f32 0.0036580483, %v830_v52 }
 0x6c0   : > { %v843_v57 = vmul.f32 %v842_v54, %v827_v44  ;;  %v832_v59 = vmul.f32 %v831_v55, %v827_v44 }
 0x6c2   : > { %v844_v58 = vadd.f32 0.112945676, %v843_v57  ;;  %v833_v63 = vadd.f32 0.05243302, %v832_v59 }
 0x6c4   : > { %v845_v61 = vmul.f32 %v844_v58, %v827_v44  ;;  %v834_v3 = vmul.f32 %v833_v63, %v827_v44 }
 0x6c6   : > { %v846_v62 = vadd.f32 0.4994258, %v845_v61  ;;  %v835_v4 = vadd.f32 0.18741608, %v834_v3 }
 0x6c8   : > { %v847_v1 = vmul.f32 %v846_v62, %v827_v44  ;;  %v836_v6 = vmul.f32 %v835_v4, %v827_v44 }
 0x6ca   : > { %v848_v2 = vadd.f32 1.0, %v847_v1  ;;  %v837_v11 = vadd.f32 1.1283791, %v836_v6 }
 0x6cc   : > { %1141 = vrcp.f32 %v848_v2  ;;  %v860_v10 = vand.u32 2147483648, %v848_v2  ;;  %v858_v14 = vand.u32 2147483647, %v848_v2  ;;  %vm854_vm1 = vweird.f32 %v848_v2 }
 0x6cd   : > { %v838_v17 = vmul.f32 %v837_v11, %v825_v41 }
 0x6ce   : > { %v861_v16 = vor.u32 1.1754944e-38, %v860_v10  ;;  %vm859_vm3 = vcmp.eq.f32.partialorder %v858_v14, 8.507059e+37 }
 0x6d2   : > { %v1142_v5 = vpop.eup %1141 }
 0x6d3   : > { %v850_v7 = vmul.f32 %v1142_v5, %v848_v2  ;;  %vm855_vm15 = vweird.f32 %v1142_v5 }
 0x6d4   : > { %vm856_vm2 = vmor %vm854_vm1, %vm855_vm15 }
 0x6d5   : > { %v851_v9 = vsub.f32 1.0, %v850_v7 }
 0x6d7   : > { %v852_v12 = vmul.f32 %v1142_v5, %v851_v9 }
 0x6d9   : > { %v853_v15 = vadd.f32 %v1142_v5, %v852_v12 }
 0x6db   : > { %v857_v18 = vsel %vm856_vm2, %v1142_v5, %v853_v15 }
 0x6dc   : > { %v862_v19 = vsel %vm859_vm3, %v861_v16, %v857_v18 }
 0x6dd   : > { %v863_v20 = vmul.f32 %v862_v19, %v838_v17 }
 0x6df   : > { %v1047_v21 = vclamps-f32 %v863_v20, 1.0 }
 0x6e1   : > { %v866_v22 = vadd.f32 1.0, %v1047_v21 }
 0x6e3   : > { %v867_v23 = vmul.f32 %v866_v22, %v824_v0 }
 0x6e5   : > { %v868_v24 = vpack.c.bf16 %v867_v23, %v867_v23 }
 0x6e7   : > { %945 = vmatmul.bf16.vlgmr.msra.gmra.mxu3 %v868_v24 }
 0x76a   : > { %v946_v27 = vpop.f32.mrf.mxu3 }
 0x76b   : > { %v947_v29 = vadd.f32 %v1118_v26, %v946_v27 }
 0x76d   : > { %v950_v30 = vadd.f32 %v947_v29, %v1304_v13 }
 0x76f   : > { %951 = vst.msk [vmem:[%s381_s25] sm:$0x3] %vm386_vm0, %v950_v30 }
 0x772   : > { %v948_v31 = vpop.f32.mrf.mxu3 }
 0x773 PF: > { %s21_s17 = sadd.s32 1, %s1149_s17  }
 0x774   : > { %p18_p4 = scmp.ge.s32.totalorder %s21_s17, 7  }
 0x776   :  { %20 = sbr.rel (!%p18_p4) target bundleno = 1 (0x1), region = 94 }

</bundles_post_ra>
